<compile_context>
chip_gen: v5e
topology: v5e:2x2
jax: 0.10.0
libtpu: 0.0.40
codegen_flags: <defaults>
</compile_context>

<pallas_src>
import jax
import jax.numpy as jnp
from jax.experimental import pallas as pl
from jax.experimental.pallas import tpu as pltpu


def _round_up(a: int, b: int) -> int:
    return ((a + b - 1) // b) * b


def _fused_linear_kernel(x_ref, w_ref, b_ref, o_ref, acc_ref):
    """One (tm x tn) output tile, accumulated over the K (hidden-dim) grid axis."""
    kk = pl.program_id(2)

    @pl.when(kk == 0)
    def _init():
        acc_ref[...] = jnp.zeros_like(acc_ref)

    acc_ref[...] += jnp.dot(x_ref[...], w_ref[...],
                            preferred_element_type=jnp.float32)

    @pl.when(kk == pl.num_programs(2) - 1)
    def _finalize():
        # Bias added once per output tile (NOT per K step).
        o_ref[...] = (acc_ref[...] + b_ref[...]).astype(o_ref.dtype)


def _linear_pallas(x2d, w, b, *, out_dtype, tm=256, tn=512, tk=512):
    """Tiled Pallas computation of x2d @ w + b.

    x2d: [M, E]; w: [E, N]; b: [N] float32.  Returns [M, N] in out_dtype.
    """
    M, E = x2d.shape
    E2, N = w.shape
    assert E == E2

    # ---- tile sizes ------------------------------------------------------
    # M tile: full dim when small (full-dim blocks are always legal), else a
    # multiple-of-8 tile.  K tile: full hidden dim if it fits, else a
    # multiple-of-128 tile streamed over the innermost (reduction) grid axis.
    # N tile: lane-dense (multiple of 128), capped at the padded output width.
    tm = M if M <= tm else tm
    tk = E if E <= tk else tk
    n_pad = _round_up(N, 128)
    tn = n_pad if n_pad <= tn else tn
    n_pad = _round_up(n_pad, tn)
    m_pad = _round_up(M, tm)
    e_pad = _round_up(E, tk)

    if (m_pad, e_pad) != (M, E):
        x2d = jnp.pad(x2d, ((0, m_pad - M), (0, e_pad - E)))
    if (e_pad, n_pad) != (E, N):
        w = jnp.pad(w, ((0, e_pad - E), (0, n_pad - N)))
    if n_pad != N:
        b = jnp.pad(b, (0, n_pad - N))
    b2d = b.reshape(1, n_pad).astype(jnp.float32)

    grid = (m_pad // tm, n_pad // tn, e_pad // tk)

    out = pl.pallas_call(
        _fused_linear_kernel,
        out_shape=jax.ShapeDtypeStruct((m_pad, n_pad), out_dtype),
        grid=grid,
        in_specs=[
            pl.BlockSpec((tm, tk), lambda i, j, k: (i, k)),   # x tile
            pl.BlockSpec((tk, tn), lambda i, j, k: (k, j)),   # fused weight tile
            pl.BlockSpec((1, tn), lambda i, j, k: (0, j)),    # bias tile
        ],
        out_specs=pl.BlockSpec((tm, tn), lambda i, j, k: (i, j)),
        scratch_shapes=[pltpu.VMEM((tm, tn), jnp.float32)],
        compiler_params=pltpu.CompilerParams(
            # M / N axes -> "parallel" (megacore / v7x dual-TC tile split),
            # K (reduction) axis -> "arbitrary" (accumulator carried).
            dimension_semantics=("parallel", "parallel", "arbitrary"),
            # Explicit limit with headroom for v7x's 64 MiB per-TC VMEM; also
            # >= the scoped defaults on v5e/v6e.
            vmem_limit_bytes=48 * 1024 * 1024,
        ),
    )(x2d, w, b2d)

    if (m_pad, n_pad) != (M, N):
        out = out[:M, :N]
    return out


def qkv_forward(q, wq, wk, wv, bq=None, bk=None, bv=None, *, k=None, v=None,
                compute_dtype=None, tm=256, tn=512, tk=512):
    """QKV.forward: returns (query, key, value).

    q/k/v: [B, S, E] activations (k, v default to q, as in the module).
    w*: [E, out_*] pre-transposed weights; b*: [out_*] or None.
    compute_dtype: optional MXU input dtype (e.g. jnp.bfloat16); accumulation
    stays float32 and the output keeps q.dtype.
    """
    if k is None and v is None:
        k = q
        v = q

    out_dtype = q.dtype
    nq, nk_, nv_ = wq.shape[1], wk.shape[1], wv.shape[1]

    def bias_f32(bias, n):
        if bias is None:
            return jnp.zeros((n,), jnp.float32)
        return bias.astype(jnp.float32)

    cast = ((lambda a: a.astype(compute_dtype)) if compute_dtype is not None
            else (lambda a: a))

    if (k is q) and (v is q):
        # Fused path: one wide, lane-dense matmul covering Q, K and V.
        B, S, E = q.shape
        w_fused = jnp.concatenate([wq, wk, wv], axis=1)
        b_fused = jnp.concatenate(
            [bias_f32(bq, nq), bias_f32(bk, nk_), bias_f32(bv, nv_)], axis=0)
        x2d = cast(q).reshape(B * S, E)
        fused = _linear_pallas(x2d, cast(w_fused), b_fused,
                               out_dtype=out_dtype, tm=tm, tn=tn, tk=tk)
        query = fused[:, :nq].reshape(B, S, nq)
        key = fused[:, nq:nq + nk_].reshape(B, S, nk_)
        value = fused[:, nq + nk_:].reshape(B, S, nv_)
        return query, key, value

    # Distinct q/k/v inputs (cross-attention): three tiled projections.
    def proj(x, w, bias, n):
        B, S, E = x.shape
        out2d = _linear_pallas(cast(x).reshape(B * S, E), cast(w),
                               bias_f32(bias, n), out_dtype=out_dtype,
                               tm=tm, tn=tn, tk=tk)
        return out2d.reshape(B, S, n)

    return proj(q, wq, bq, nq), proj(k, wk, bk, nk_), proj(v, wv, bv, nv_)


if __name__ == "__main__":
    # --- Module hyper-parameters (small; consistent with QKV.__init__) -----
    emb_dim = 32
    nheads = 4
    kvheads = 2
    emb_kq_per_head = 8
    emb_v_per_head = 8
    B, S = 2, 8

    nq = nheads * emb_kq_per_head
    nk = kvheads * emb_kq_per_head
    nv = kvheads * emb_v_per_head

    key = jax.random.PRNGKey(0)
    kx, kxk, kxv, kwq, kwk, kwv, kbq, kbk, kbv = jax.random.split(key, 9)

    dtype = jnp.float32
    x = jax.random.normal(kx, (B, S, emb_dim), dtype)
    wq = jax.random.normal(kwq, (emb_dim, nq), dtype) * 0.02
    wk = jax.random.normal(kwk, (emb_dim, nk), dtype) * 0.02
    wv = jax.random.normal(kwv, (emb_dim, nv), dtype) * 0.02
    bq = jax.random.normal(kbq, (nq,), dtype) * 0.01
    bk = jax.random.normal(kbk, (nk,), dtype) * 0.01
    bv = jax.random.normal(kbv, (nv,), dtype) * 0.01

    # 1) Self-attention style call (k = v = None -> fused single-matmul path).
    q_out, k_out, v_out = qkv_forward(x, wq, wk, wv, bq, bk, bv)
    jax.block_until_ready((q_out, k_out, v_out))
    q_ref = x @ wq + bq
    k_ref = x @ wk + bk
    v_ref = x @ wv + bv
    assert q_out.shape == (B, S, nq)
    assert k_out.shape == (B, S, nk)
    assert v_out.shape == (B, S, nv)
    assert jnp.allclose(q_out, q_ref, atol=1e-5, rtol=1e-5)
    assert jnp.allclose(k_out, k_ref, atol=1e-5, rtol=1e-5)
    assert jnp.allclose(v_out, v_ref, atol=1e-5, rtol=1e-5)

    # 2) Cross-attention style call (distinct k/v inputs -> unfused path).
    xk = jax.random.normal(kxk, (B, S, emb_dim), dtype)
    xv = jax.random.normal(kxv, (B, S, emb_dim), dtype)
    q2, k2, v2 = qkv_forward(x, wq, wk, wv, bq, bk, bv, k=xk, v=xv)
    jax.block_until_ready((q2, k2, v2))
    assert jnp.allclose(q2, x @ wq + bq, atol=1e-5, rtol=1e-5)
    assert jnp.allclose(k2, xk @ wk + bk, atol=1e-5, rtol=1e-5)
    assert jnp.allclose(v2, xv @ wv + bv, atol=1e-5, rtol=1e-5)

    # 3) Multi-tile grid check: tile over M, over fused N, and over the hidden
    #    (K) reduction axis to exercise the f32 accumulator + bias-in-finalize
    #    path with a full 3-D grid.
    E2, nh2, kvh2, hd2 = 256, 4, 2, 64
    nq2, nk2, nv2 = nh2 * hd2, kvh2 * hd2, kvh2 * hd2
    kx2, kw2q, kw2k, kw2v, kb2 = jax.random.split(jax.random.PRNGKey(1), 5)
    x2 = jax.random.normal(kx2, (B, S, E2), dtype)
    w2q = jax.random.normal(kw2q, (E2, nq2), dtype) * 0.02
    w2k = jax.random.normal(kw2k, (E2, nk2), dtype) * 0.02
    w2v = jax.random.normal(kw2v, (E2, nv2), dtype) * 0.02
    b2q = jax.random.normal(kb2, (nq2,), dtype) * 0.1
    hi = jax.lax.Precision.HIGHEST
    q3, k3, v3 = qkv_forward(x2, w2q, w2k, w2v, b2q, None, None,
                             tm=8, tn=128, tk=128)
    jax.block_until_ready((q3, k3, v3))
    x2f = x2.reshape(-1, E2)
    ref_q3 = (jnp.dot(x2f, w2q, precision=hi) + b2q).reshape(B, S, nq2)
    ref_k3 = jnp.dot(x2f, w2k, precision=hi).reshape(B, S, nk2)
    ref_v3 = jnp.dot(x2f, w2v, precision=hi).reshape(B, S, nv2)
    assert jnp.allclose(q3, ref_q3, atol=1e-4, rtol=1e-4)
    assert jnp.allclose(k3, ref_k3, atol=1e-4, rtol=1e-4)
    assert jnp.allclose(v3, ref_v3, atol=1e-4, rtol=1e-4)

    # 4) bf16 MXU-input path (f32 accumulation) on the same multi-tile config.
    q4, _, _ = qkv_forward(x2, w2q, w2k, w2v, b2q, None, None,
                           compute_dtype=jnp.bfloat16, tm=8, tn=128, tk=128)
    jax.block_until_ready(q4)
    xb = x2f.astype(jnp.bfloat16).astype(jnp.float32)
    wb = w2q.astype(jnp.bfloat16).astype(jnp.float32)
    ref_q4 = (jnp.dot(xb, wb, precision=hi) + b2q).reshape(B, S, nq2)
    assert jnp.allclose(q4, ref_q4, atol=1e-2, rtol=1e-2)

    print("KERNEL_OK")
</pallas_src>

<mosaic_0001>
module attributes {stable_mosaic.version = 11 : i64} {
  func.func @_fused_linear_kernel(%arg0: i32, %arg1: i32, %arg2: i32, %arg3: memref<16x32xf32, #tpu.memory_space<vmem>>, %arg4: memref<32x128xf32, #tpu.memory_space<vmem>>, %arg5: memref<1x128xf32, #tpu.memory_space<vmem>>, %arg6: memref<16x128xf32, #tpu.memory_space<vmem>>, %arg7: memref<16x128xf32, #tpu.memory_space<vmem>>) attributes {dimension_semantics = [#tpu.dimension_semantics<parallel>, #tpu.dimension_semantics<parallel>, #tpu.dimension_semantics<arbitrary>], iteration_bounds = array<i64: 1, 1, 1>, scalar_prefetch = 0 : i64, scratch_operands = 1 : i64, tpu.core_type = #tpu.core_type<tc>, window_params = [{transform_indices = @transform_0, window_bounds = array<i64: 16, 32>}, {transform_indices = @transform_1, window_bounds = array<i64: 32, 128>}, {transform_indices = @transform_2, window_bounds = array<i64: 1, 128>}, {transform_indices = @transform_3, window_bounds = array<i64: 16, 128>}]} {
    %c0_i32 = arith.constant 0 : i32
    %0 = arith.cmpi eq, %arg2, %c0_i32 : i32
    %1 = arith.extui %0 : i1 to i32
    %c0_i32_0 = arith.constant 0 : i32
    %2 = arith.cmpi ne, %1, %c0_i32_0 : i32
    scf.if %2 {
      %cst_10 = arith.constant 0.000000e+00 : f32
      %12 = vector.broadcast %cst_10 : f32 to vector<16x128xf32>
      %c0_11 = arith.constant 0 : index
      %c0_12 = arith.constant 0 : index
      %13 = vector.load %arg7[%c0_11, %c0_12] : memref<16x128xf32, #tpu.memory_space<vmem>>, vector<16x128xf32>
      tpu.vector_store %arg7[%c0_11, %c0_12], %12 {strides = array<i32>} : memref<16x128xf32, #tpu.memory_space<vmem>>, vector<16x128xf32>,
    } else {
    }
    %c0 = arith.constant 0 : index
    %c0_1 = arith.constant 0 : index
    %3 = vector.load %arg7[%c0, %c0_1] : memref<16x128xf32, #tpu.memory_space<vmem>>, vector<16x128xf32>
    %c0_2 = arith.constant 0 : index
    %c0_3 = arith.constant 0 : index
    %4 = vector.load %arg3[%c0_2, %c0_3] : memref<16x32xf32, #tpu.memory_space<vmem>>, vector<16x32xf32>
    %c0_4 = arith.constant 0 : index
    %c0_5 = arith.constant 0 : index
    %5 = vector.load %arg4[%c0_4, %c0_5] : memref<32x128xf32, #tpu.memory_space<vmem>>, vector<32x128xf32>
    %cst = arith.constant dense<0.000000e+00> : vector<16x128xf32>
    %6 = tpu.matmul %4, %5, %cst {dimension_numbers = #tpu.dot_dimension_numbers<[1], [0], [0], [1], [0, 0, 1, 1], [], []>} : vector<16x32xf32>, vector<32x128xf32>, vector<16x128xf32> -> vector<16x128xf32>
    %7 = arith.addf %3, %6 : vector<16x128xf32>
    %c0_6 = arith.constant 0 : index
    %c0_7 = arith.constant 0 : index
    %8 = vector.load %arg7[%c0_6, %c0_7] : memref<16x128xf32, #tpu.memory_space<vmem>>, vector<16x128xf32>
    tpu.vector_store %arg7[%c0_6, %c0_7], %7 {strides = array<i32>} : memref<16x128xf32, #tpu.memory_space<vmem>>, vector<16x128xf32>,
    %c0_i32_8 = arith.constant 0 : i32
    %9 = arith.cmpi eq, %arg2, %c0_i32_8 : i32
    %10 = arith.extui %9 : i1 to i32
    %c0_i32_9 = arith.constant 0 : i32
    %11 = arith.cmpi ne, %10, %c0_i32_9 : i32
    scf.if %11 {
      %c0_10 = arith.constant 0 : index
      %c0_11 = arith.constant 0 : index
      %12 = vector.load %arg7[%c0_10, %c0_11] : memref<16x128xf32, #tpu.memory_space<vmem>>, vector<16x128xf32>
      %c0_12 = arith.constant 0 : index
      %c0_13 = arith.constant 0 : index
      %13 = vector.load %arg5[%c0_12, %c0_13] : memref<1x128xf32, #tpu.memory_space<vmem>>, vector<1x128xf32>
      %14 = vector.broadcast %13 : vector<1x128xf32> to vector<16x128xf32>
      %15 = arith.addf %12, %14 : vector<16x128xf32>
      %c0_14 = arith.constant 0 : index
      %c0_15 = arith.constant 0 : index
      %16 = vector.load %arg6[%c0_14, %c0_15] : memref<16x128xf32, #tpu.memory_space<vmem>>, vector<16x128xf32>
      tpu.vector_store %arg6[%c0_14, %c0_15], %15 {strides = array<i32>} : memref<16x128xf32, #tpu.memory_space<vmem>>, vector<16x128xf32>,
    } else {
    }
    return
  }
  func.func @transform_0(%arg0: i32, %arg1: i32, %arg2: i32) -> (i32, i32) {
    %c0_i32 = arith.constant 0 : i32
    return %arg0, %arg2 : i32, i32
  }
  func.func @transform_1(%arg0: i32, %arg1: i32, %arg2: i32) -> (i32, i32) {
    %c0_i32 = arith.constant 0 : i32
    return %arg2, %arg1 : i32, i32
  }
  func.func @transform_2(%arg0: i32, %arg1: i32, %arg2: i32) -> (i32, i32) {
    %c0_i32 = arith.constant 0 : i32
    %c0_i32_0 = arith.constant 0 : i32
    return %c0_i32, %arg1 : i32, i32
  }
  func.func @transform_3(%arg0: i32, %arg1: i32, %arg2: i32) -> (i32, i32) {
    %c0_i32 = arith.constant 0 : i32
    return %arg0, %arg1 : i32, i32
  }
}

</mosaic_0001>

<bundles_post_ra>
// kernel: tpu_custom_call.1
= control target key start
LH: loop header
LB: loop body
LE: loop exit
PB: predicated region body
PF: predicated region fallthrough
CT: control target
= control target key end

     0   :  { %8 = vsyncpa [#allocation4], 0  ;;  %s264_s0 = inlined_call_operand.hbm [shape: f32[16,32], index: 0, kind: input, shape index: {}]   ;;  %s265_s1 = inlined_call_operand.hbm [shape: f32[32,128], index: 1, kind: input, shape index: {}]   ;;  %s266_s2 = inlined_call_operand.vmem [shape: f32[1,128], index: 2, kind: input, shape index: {}]   ;;  %s267_s3 = inlined_call_operand.hbm [shape: f32[16,128], index: 3, kind: output, shape index: {}]  }
   0x1   :  { %9 = vsyncpa [#allocation7], 0 }
   0x2   :  { %10 = vsyncpa [#allocation5], 0  ;;  %s15_s14 = sshll.u32 %s264_s0, 4  ;;  %s218_s15 = smov [#allocation3]   ;;  %s16_s14 = int_to_ptr.hbm [resolvable:$true] %s15_s14 }
   0x3   :  { %s17_s16 = sshll.u32 %s218_s15, 4  ;;  %s28_s19 = sshll.u32 %s265_s1, 4  ;;  %s18_s16 = int_to_ptr.vmem [resolvable:$true] %s17_s16  ;;  %s29_s19 = int_to_ptr.hbm [resolvable:$true] %s28_s19 }
   0x4   :  { %s219_s20 = smov 128   ;;  %s220_s21 = smov 8  }
   0x5   :  { %23 = dma.hbm_to_vmem [thread:$0]  %s16_s14, 256, %s18_s16, [#allocation4], %s219_s20, %s219_s20, %s220_s21  }
   0x6   :  { %s221_s22 = smov [#allocation6]  }
   0x7   :  { %s30_s23 = sshll.u32 %s221_s22, 4  ;;  %s31_s23 = int_to_ptr.vmem [resolvable:$true] %s30_s23 }
   0x8   :  { %36 = dma.hbm_to_vmem [thread:$0]  %s29_s19, 512, %s31_s23, [#allocation7], %s219_s20, %s219_s20, %s220_s21  }
   0x9   :  { %212 = dma.done.wait [#allocation4], 256  }
   0xa   :  { %213 = vsyncadd [#allocation4], 4294967040 }
   0xb   :  { %214 = dma.done.wait [#allocation7], 512  }
   0xc   :  { %215 = vsyncadd [#allocation7], 4294966784  ;;  %v60_v0 = vld [vmem:[#allocation6 + $0x18] sm:$0xff]  ;;  %v59_v1 = vld [vmem:[#allocation6 + $0x10] sm:$0xff]  ;;  %vm61_vm0 = vcmask 261120   ;;  %s222_s24 = smov [#allocation8]  }
   0xd   :  { %80 = vmatpush.msra.mxu0 %v60_v0  ;;  %130 = vmatpush.msra.mxu1 %v60_v0  ;;  %v58_v2 = vld [vmem:[#allocation6 + $0x8] sm:$0xff]  ;;  %v57_v3 = vld [vmem:[#allocation6] sm:$0xff]  ;;  %v55_v4 = vld [vmem:[#allocation3] sm:$0xff]  ;;  %s112_s25 = sshll.u32 %s222_s24, 4  ;;  %s114_s28 = sshll.u32 %s267_s3, 4  ;;  %s113_s25 = int_to_ptr.vmem [resolvable:$true] %s112_s25  ;;  %s115_s28 = int_to_ptr.hbm [resolvable:$true] %s114_s28 }
   0xe   :  { %v56_v5 = vld [vmem:[#allocation3 + $0x8] sm:$0xff]  ;;  %v139_v6 = vld [vmem:[%s266_s2] ss:$0 sm:$0xff] }
   0xf   :  { %81 = vmatpush.msra.mxu0 %v59_v1  ;;  %131 = vmatpush.msra.mxu1 %v59_v1 }
  0x11   :  { %82 = vmatpush.msra.mxu0 %v58_v2  ;;  %132 = vmatpush.msra.mxu1 %v58_v2 }
  0x13   :  { %83 = vmatpush.msra.mxu0 %v57_v3  ;;  %133 = vmatpush.msra.mxu1 %v57_v3 }
  0x14   :  { %128 = vmatmul.msk.f32.vlgmr.msra.gmra.mxu0 %vm61_vm0, %v55_v4  ;;  %129 = vmatmul.msk.f32.vlgmr.msra.gmra.mxu1 %vm61_vm0, %v56_v5 }
  0x91   :  { %v85_v7 = vpop.f32.mrf.mxu0  ;;  %v88_v8 = vpop.f32.mrf.mxu1 }
  0x92   :  { %v104_v9 = vadd.f32 %v139_v6, %v85_v7  ;;  %v105_v10 = vadd.f32 %v139_v6, %v88_v8 }
  0x94   :  { %106 = vst [vmem:[#allocation8] sm:$0xff] %v104_v9 }
  0x95   :  { %107 = vst [vmem:[#allocation8 + $0x8] sm:$0xff] %v105_v10 }
  0x96   :  { %120 = dma.vmem_to_hbm [thread:$0]  %s113_s25, 256, %s115_s28, [#allocation5], %s219_s20, %s219_s20, %s220_s21  }
  0x97   :  { %216 = dma.done.wait [#allocation5], 256  }
  0x98   :  { %217 = vsyncadd [#allocation5], 4294967040 }
  0x99   :  { %125 = vsyncpa [#allocation4], 1 }
  0x9a   :  { %126 = vsyncpa [#allocation7], 1 }
  0x9b   :  { %127 = vsyncpa [#allocation5], 1 }

</bundles_post_ra>
